<compile_context>
chip_gen: v6e
topology: v6e:2x2x1
jax: 0.10.0
libtpu: 0.0.40
codegen_flags: <defaults>
</compile_context>

<pallas_src>
import functools

import jax
import jax.numpy as jnp
from jax.experimental import pallas as pl
from jax.experimental.pallas import tpu as pltpu


def _focal_elems(x, t, gamma):
    """Per-element focal term (without alpha), f32 inputs."""
    # Numerically-stable BCE-with-logits (same formula PyTorch uses):
    #   bce = max(x, 0) - x*t + log(1 + exp(-|x|))
    bce = jnp.maximum(x, 0.0) - x * t + jnp.log1p(jnp.exp(-jnp.abs(x)))
    pt = jnp.exp(-bce)
    omp = 1.0 - pt  # in [0, 1) since bce >= 0

    # Strength-reduce small integer gammas (trace-time Python branch).
    g_int = int(gamma)
    if float(gamma) == float(g_int) and 0 <= g_int <= 4:
        if g_int == 0:
            mod = jnp.ones_like(omp)
        else:
            mod = omp
            for _ in range(g_int - 1):
                mod = mod * omp
    else:
        # exp(gamma*log(0)) == 0 for gamma > 0, so no jnp.where guard needed.
        mod = jnp.power(omp, gamma)
    return mod * bce


def _focal_loss_kernel(logits_ref, targets_ref, out_ref, *,
                       gamma, total_rows, block_rows, chunk_rows, lane,
                       needs_mask):
    i = pl.program_id(0)
    num_chunks = block_rows // chunk_rows

    def body(c, acc):
        r0 = pl.multiple_of(c * chunk_rows, 8)
        x = logits_ref[pl.ds(r0, chunk_rows), :].astype(jnp.float32)
        t = targets_ref[pl.ds(r0, chunk_rows), :].astype(jnp.float32)
        contrib = _focal_elems(x, t, gamma)

        if needs_mask:
            # Last grid block may be partial: rows >= total_rows are stale
            # VMEM garbage -> zero them with a pure select (NaN/Inf in the
            # unselected branch cannot propagate through a select).
            row_ids = jax.lax.broadcasted_iota(
                jnp.int32, (chunk_rows, lane), 0)
            global_row = i * block_rows + r0 + row_ids
            contrib = jnp.where(global_row < total_rows, contrib, 0.0)

        # Sublane-group partial sum: (chunk_rows,128) -> (chunk_rows//8,8,128)
        # -> sum over leading axis (pure VPU adds, no cross-lane XLU work).
        return acc + contrib.reshape(chunk_rows // 8, 8, lane).sum(axis=0)

    acc = jax.lax.fori_loop(0, num_chunks, body,
                            jnp.zeros((8, lane), jnp.float32),
                            unroll=True)
    out_ref[...] = acc


def focal_loss(logits, targets, alpha=0.25, gamma=2.0, reduction="mean",
               row_tile=4096, lane=128):
    """Pallas TPU focal loss. logits/targets: any shape, same shape."""
    assert logits.shape == targets.shape
    assert reduction in ("mean", "sum"), "reduction must be 'mean' or 'sum'"

    total = int(logits.size)
    x_flat = logits.reshape(-1)           # native dtype; no wrapper-side cast
    t_flat = targets.reshape(-1)

    # dtype-aware sublane multiple for block alignment (f32:8, bf16:16, i8:32)
    def _sub(dt):
        return {4: 8, 2: 16, 1: 32}.get(jnp.dtype(dt).itemsize, 8)
    sub = max(_sub(logits.dtype), _sub(targets.dtype))

    rows = total // lane                   # full 128-lane rows
    use_kernel = rows >= sub

    partial_sum = jnp.float32(0.0)
    main_elems = 0

    if use_kernel:
        main_rows = rows
        main_elems = main_rows * lane

        # --- block size selection ------------------------------------------
        max_block = (main_rows // sub) * sub        # largest aligned block
        block_rows = min(int(row_tile), max_block)
        block_rows = max(sub, (block_rows // sub) * sub)
        num_blocks = -(-main_rows // block_rows)
        if num_blocks == 1 and main_rows >= 2 * sub:
            # Keep >= 2 grid blocks so v7x's second TensorCore has work.
            half = -(-main_rows // 2)
            block_rows = min(max_block, ((half + sub - 1) // sub) * sub)
            num_blocks = -(-main_rows // block_rows)
        # Compute sub-chunk (bounds live f32 temporaries to ~a few hundred KiB)
        chunk_rows = 512 if (block_rows % 512 == 0) else block_rows
        needs_mask = (main_rows % block_rows) != 0

        # Aligned-prefix view: a pure reshape (no copy) when total % 128 == 0.
        x2 = x_flat[:main_elems].reshape(main_rows, lane)
        t2 = t_flat[:main_elems].reshape(main_rows, lane)

        kernel = functools.partial(
            _focal_loss_kernel,
            gamma=float(gamma),
            total_rows=main_rows,
            block_rows=block_rows,
            chunk_rows=chunk_rows,
            lane=lane,
            needs_mask=needs_mask,
        )

        # Explicit VMEM budget: 2 pipeline buffers per input (native dtype)
        # plus headroom for the chunk-sized f32 temporaries and outputs.
        in_itemsize = (jnp.dtype(logits.dtype).itemsize
                       + jnp.dtype(targets.dtype).itemsize)
        pipeline_bytes = 2 * block_rows * lane * in_itemsize
        vmem_limit = min(40 * 1024 * 1024, pipeline_bytes + 12 * 1024 * 1024)

        partials = pl.pallas_call(
            kernel,
            out_shape=jax.ShapeDtypeStruct((num_blocks * 8, lane),
                                           jnp.float32),
            grid_spec=pltpu.PrefetchScalarGridSpec(
                num_scalar_prefetch=0,
                grid=(num_blocks,),
                in_specs=[
                    pl.BlockSpec((block_rows, lane), lambda i: (i, 0)),
                    pl.BlockSpec((block_rows, lane), lambda i: (i, 0)),
                ],
                out_specs=pl.BlockSpec((8, lane), lambda i: (i, 0)),
            ),
            compiler_params=pltpu.CompilerParams(
                dimension_semantics=("parallel",),   # megacore on v7x
                vmem_limit_bytes=int(vmem_limit)),
        )(x2, t2)
        partial_sum = jnp.sum(partials)

    # <128-element tail (or everything, for tiny inputs) in plain JAX.
    tail = total - main_elems
    if tail > 0:
        xt = x_flat[main_elems:].astype(jnp.float32)
        tt = t_flat[main_elems:].astype(jnp.float32)
        partial_sum = partial_sum + jnp.sum(_focal_elems(xt, tt, float(gamma)))

    # alpha is a uniform scalar (matches the PyTorch reference module).
    total_sum = partial_sum * jnp.float32(alpha)
    if reduction == "mean":
        return total_sum / jnp.float32(total)
    return total_sum


def focal_loss_ref(logits, targets, alpha=0.25, gamma=2.0, reduction="mean"):
    x = logits.astype(jnp.float32)
    t = targets.astype(jnp.float32)
    bce = jnp.maximum(x, 0.0) - x * t + jnp.log1p(jnp.exp(-jnp.abs(x)))
    pt = jnp.exp(-bce)
    fl = alpha * (1.0 - pt) ** gamma * bce
    return fl.mean() if reduction == "mean" else fl.sum()


if __name__ == "__main__":
    key = jax.random.PRNGKey(0)
    k1, k2, k3, k4 = jax.random.split(key, 4)

    # Small NCHW-like shape: batch=2, channels=4, spatial=16x16 -> 2048 elems.
    shape = (2, 4, 16, 16)
    logits = jax.random.normal(k1, shape, dtype=jnp.float32) * 2.0
    targets = (jax.random.uniform(k2, shape) > 0.5).astype(jnp.float32)

    out = focal_loss(logits, targets, alpha=0.25, gamma=2.0, reduction="mean")
    out = jax.block_until_ready(out)
    ref = focal_loss_ref(logits, targets)
    assert jnp.allclose(out, ref, rtol=1e-5, atol=1e-6), (out, ref)

    # Awkward (non-128-multiple) shape exercises the partial-block mask and
    # the plain-JAX tail path.
    shape2 = (2, 3, 15, 15)
    logits2 = jax.random.normal(k3, shape2, dtype=jnp.float32) * 2.0
    targets2 = (jax.random.uniform(k4, shape2) > 0.5).astype(jnp.float32)

    out2 = focal_loss(logits2, targets2, alpha=0.25, gamma=2.0,
                      reduction="sum")
    out2 = jax.block_until_ready(out2)
    ref2 = focal_loss_ref(logits2, targets2, reduction="sum")
    assert jnp.allclose(out2, ref2, rtol=1e-5, atol=1e-5), (out2, ref2)

    print("KERNEL_OK")
</pallas_src>

<mosaic_0001>
module attributes {stable_mosaic.version = 11 : i64} {
  func.func @_focal_loss_kernel(%arg0: i32, %arg1: memref<8x128xf32, #tpu.memory_space<vmem>>, %arg2: memref<8x128xf32, #tpu.memory_space<vmem>>, %arg3: memref<8x128xf32, #tpu.memory_space<vmem>>) attributes {dimension_semantics = [#tpu.dimension_semantics<parallel>], iteration_bounds = array<i64: 2>, scalar_prefetch = 0 : i64, scratch_operands = 0 : i64, tpu.core_type = #tpu.core_type<tc>, window_params = [{transform_indices = @transform_0, window_bounds = array<i64: 8, 128>}, {transform_indices = @transform_1, window_bounds = array<i64: 8, 128>}, {transform_indices = @transform_2, window_bounds = array<i64: 8, 128>}]} {
    %cst = arith.constant 0.000000e+00 : f32
    %0 = vector.broadcast %cst : f32 to vector<8x128xf32>
    %c0_i32 = arith.constant 0 : i32
    %c8_i32 = arith.constant 8 : i32
    %1 = arith.muli %c0_i32, %c8_i32 : i32
    %2 = tpu.assume_multiple %1, 8 : i32
    %3 = arith.index_cast %2 : i32 to index
    %c0 = arith.constant 0 : index
    %4 = vector.load %arg1[%3, %c0] : memref<8x128xf32, #tpu.memory_space<vmem>>, vector<8x128xf32>
    %5 = arith.index_cast %2 : i32 to index
    %c0_0 = arith.constant 0 : index
    %6 = vector.load %arg2[%5, %c0_0] : memref<8x128xf32, #tpu.memory_space<vmem>>, vector<8x128xf32>
    %cst_1 = arith.constant 0.000000e+00 : f32
    %7 = vector.broadcast %cst_1 : f32 to vector<8x128xf32>
    %8 = arith.maximumf %4, %7 : vector<8x128xf32>
    %9 = arith.mulf %4, %6 : vector<8x128xf32>
    %10 = arith.subf %8, %9 : vector<8x128xf32>
    %11 = math.absf %4 : vector<8x128xf32>
    %cst_2 = arith.constant 0.000000e+00 : f32
    %12 = vector.broadcast %cst_2 : f32 to vector<8x128xf32>
    %13 = arith.subf %12, %11 : vector<8x128xf32>
    %14 = math.exp %13 : vector<8x128xf32>
    %15 = math.log1p %14 : vector<8x128xf32>
    %16 = arith.addf %10, %15 : vector<8x128xf32>
    %cst_3 = arith.constant 0.000000e+00 : f32
    %17 = vector.broadcast %cst_3 : f32 to vector<8x128xf32>
    %18 = arith.subf %17, %16 : vector<8x128xf32>
    %19 = math.exp %18 : vector<8x128xf32>
    %cst_4 = arith.constant 1.000000e+00 : f32
    %20 = vector.broadcast %cst_4 : f32 to vector<8x128xf32>
    %21 = arith.subf %20, %19 : vector<8x128xf32>
    %22 = arith.mulf %21, %21 : vector<8x128xf32>
    %23 = arith.mulf %22, %16 : vector<8x128xf32>
    %24 = vector.shape_cast %23 : vector<8x128xf32> to vector<1x8x128xf32>
    %cst_5 = arith.constant dense<0.000000e+00> : vector<8x128xf32>
    %25 = vector.multi_reduction <add>, %24, %cst_5 [0] : vector<1x8x128xf32> to vector<8x128xf32>
    %26 = arith.addf %0, %25 : vector<8x128xf32>
    %c1_i32 = arith.constant 1 : i32
    %c0_6 = arith.constant 0 : index
    %c0_7 = arith.constant 0 : index
    %27 = vector.load %arg3[%c0_6, %c0_7] : memref<8x128xf32, #tpu.memory_space<vmem>>, vector<8x128xf32>
    tpu.vector_store %arg3[%c0_6, %c0_7], %26 {strides = array<i32>} : memref<8x128xf32, #tpu.memory_space<vmem>>, vector<8x128xf32>,
    return
  }
  func.func @transform_0(%arg0: i32) -> (i32, i32) {
    %c0_i32 = arith.constant 0 : i32
    %c0_i32_0 = arith.constant 0 : i32
    return %arg0, %c0_i32 : i32, i32
  }
  func.func @transform_1(%arg0: i32) -> (i32, i32) {
    %c0_i32 = arith.constant 0 : i32
    %c0_i32_0 = arith.constant 0 : i32
    return %arg0, %c0_i32 : i32, i32
  }
  func.func @transform_2(%arg0: i32) -> (i32, i32) {
    %c0_i32 = arith.constant 0 : i32
    %c0_i32_0 = arith.constant 0 : i32
    return %arg0, %c0_i32 : i32, i32
  }
}

</mosaic_0001>

<bundles_post_ra>
// kernel: tpu_custom_call.1
= control target key start
LH: loop header
LB: loop body
LE: loop exit
PB: predicated region body
PF: predicated region fallthrough
CT: control target
= control target key end

     0   :  { %7 = vsyncpa [#allocation3], 0  ;;  %s746_s0 = inlined_call_operand.hbm [shape: f32[16,128], index: 0, kind: input, shape index: {}]   ;;  %s747_s1 = inlined_call_operand.hbm [shape: f32[16,128], index: 1, kind: input, shape index: {}]   ;;  %s748_s2 = inlined_call_operand.hbm [shape: f32[16,128], index: 2, kind: output, shape index: {}]  }
   0x1   :  { %9 = vsyncpa [#allocation3 + $0x1], 0 }
   0x2   :  { %10 = vsyncpa [#allocation6], 0 }
   0x3   :  { %12 = vsyncpa [#allocation6 + $0x1], 0 }
   0x4   :  { %13 = vsyncpa [#allocation4], 0 }
   0x5   :  { %15 = vsyncpa [#allocation4 + $0x1], 0  ;;  %s547_s9 = smov 0   ;;  %s549_s10 = smov 0  }
   0x6   :  { %s551_s11 = smov 0   ;;  %s553_s12 = smov 0  }
   0x7 LB: > { %s568_s13 = sadd.s32 4294967295, %s527_s12   ;;  %s331_s14 = sadd.s32 4294967294, %s527_s12   ;;  %s527_s12 = sphi %s553_s12, %s767_s12   ;;  %s523_s11 = sphi %s551_s11, %s766_s11   ;;  %s519_s10 = sphi %s549_s10, %s765_s10   ;;  %s515_s9 = sphi %s547_s9, %s764_s9  }
   0x8   : > { %s572_s15 = sadd.s32 1, %s527_s12   ;;  %s28_s16 = sadd.s32 1, %s523_s11 }
   0x9   : > { %s25_s17 = ssub.s32 %s527_s12, %s572_s15  ;;  %p35_p0 = scmp.ne.s32.totalorder %s523_s11, %s519_s10 }
   0xa   : > { %p26_p1 = scmp.eq.s32.totalorder %s25_s17, 0  ;;  %p36_p2 = scmp.eq.s32.totalorder %s527_s12, 0 }
   0xb   : > { %p41_p3 = scmp.ne.s32.totalorder %s519_s10, %s515_s9  ;;  %p42_p4 = scmp.eq.s32.totalorder %s568_s13, 0 }
   0xc   : > { %s584_s18 = scalar_select %p26_p1, %s523_s11, %s28_s16  }
   0xd   : > { %p586_p5 = por %p36_p2, %p35_p0  ;;  %p590_p6 = por %p42_p4, %p41_p3 }
   0xe   : > { %p91_p7 = scmp.eq.s32.totalorder %s568_s13, 1  ;;  %p97_p8 = scmp.eq.s32.totalorder %s331_s14, 1 }
   0xf   : > { %s752_s20 = scalar_select %p590_p6, 1, 0 }
  0x10   : > { %p363_p10 = scmp.lt.s32.totalorder %s527_s12, 2  ;;  %p597_p11 = por %p91_p7, %p35_p0 }
  0x11   : > { %p601_p12 = por %p97_p8, %p41_p3  ;;  %s606_s23 = sand.u32 1, %s523_s11  }
  0x12   : > { %s753_s21 = scalar_select %p597_p11, 1, 0 }
  0x13   : > { %s754_s22 = scalar_select %p601_p12, 1, 0 }
  0x14   : > { %s335_s24 = sshll.u32 %s527_s12, 7  ;;  %s334_s25 = sshll.u32 %s606_s23, 3 }
  0x15   : > { %s615_s28 = scalar_lea.hbm %s746_s0, %s335_s24  ;;  %s121_s29 = scalar_lea.vmem [#allocation2], %s334_s25 }
  0x16   : > { %s128_s30 = sshll.u32 %s121_s29, 4  ;;  %p621_p13 = pnand %p363_p10, %p586_p5  ;;  %s625_s30 = int_to_ptr.vmem [resolvable:$true] %s128_s30 }
  0x17   : > { %s118_s4 = scalar_lea.sflag [#allocation3], %s606_s23  ;;  %s403_s5 = scalar_lea.hbm %s615_s28, 128 }
  0x18   : > { %p404_p2 = scmp.ne.s32.totalorder %s615_s28, %s403_s5  ;;  %p405_p3 = pneg %p621_p13 }
  0x19   : > { %s408_s8 = scalar_lea.hbm %s746_s0, 256  ;;  %p409_p5 = scmp.lt.s32.totalorder %s615_s28, %s746_s0 }
  0x1a   : > { %p406_p4 = pnand %p405_p3, %p404_p2  ;;  %p410_p8 = scmp.lt.s32.totalorder %s408_s8, %s403_s5 }
  0x1c   : > { %p407_p7 = pneg %p406_p4  ;;  %p411_p10 = por %p410_p8, %p409_p5 }
  0x1e   : > { %p412_p9 = pnand %p411_p10, %p407_p7 }
  0x20   : > { %415 = shalt.err (!%p412_p9)
}
  0x21   : > { %s416_s17 = scalar_lea.vmem %s625_s30, 128  ;;  %s529_s19 = smov [#allocation2]  }
  0x22   : > { %p417_p0 = scmp.ne.s32.totalorder %s625_s30, %s416_s17  ;;  %s421_s26 = sshll.u32 %s529_s19, 4  ;;  %s422_s26 = int_to_ptr.vmem [resolvable:$false] %s421_s26 }
  0x23   : > { %s423_s27 = scalar_lea.vmem %s422_s26, 256  ;;  %p424_p1 = scmp.lt.s32.totalorder %s625_s30, %s422_s26 }
  0x24   : > { %p419_p2 = pnand %p417_p0, %p405_p3  ;;  %p425_p12 = scmp.lt.s32.totalorder %s423_s27, %s416_s17 }
  0x26   : > { %p420_p4 = pneg %p419_p2  ;;  %p426_p11 = por %p425_p12, %p424_p1 }
  0x28   : > { %p427_p5 = pnand %p426_p11, %p420_p4 }
  0x2a   : > { %430 = shalt.err (!%p427_p5)
}
  0x2b   : > { %355 = dma.hbm_to_vmem [thread:$0]  (!%p621_p13), %s615_s28, 128, %s625_s30, %s118_s4  }
  0x2c   : > { %p756_p9 = scmp.lt.s32.totalorder %s527_s12, 3  ;;  %p757_p0 = scmp.ge.s32.totalorder %s527_s12, 1 }
  0x2d   : > { %s667_s7 = scalar_lea.hbm %s747_s1, %s335_s24  ;;  %s139_s8 = scalar_lea.vmem [#allocation5], %s334_s25 }
  0x2e   : > { %p658_p7 = pnand %p757_p0, %p756_p9  ;;  %s146_s14 = sshll.u32 %s139_s8, 4  ;;  %s147_s14 = int_to_ptr.vmem [resolvable:$true] %s146_s14 }
  0x2f   : > { %s136_s28 = scalar_lea.sflag [#allocation6], %s606_s23  ;;  %s431_s30 = scalar_lea.hbm %s667_s7, 128 }
  0x30   : > { %s758_s29 = scalar_select %p658_p7, 1, 0 }
  0x31   : > { %p432_p11 = scmp.ne.s32.totalorder %s667_s7, %s431_s30  ;;  %s436_s17 = scalar_lea.hbm %s747_s1, 256 }
  0x32   : > { %p437_p8 = scmp.lt.s32.totalorder %s667_s7, %s747_s1  ;;  %p438_p10 = scmp.lt.s32.totalorder %s436_s17, %s431_s30 }
  0x33   : > { %p434_p12 = pnand %p432_p11, %p405_p3 }
  0x34   : > { %p439_p2 = por %p438_p10, %p437_p8 }
  0x35   : > { %p435_p1 = pneg %p434_p12 }
  0x37   : > { %p440_p4 = pnand %p439_p2, %p435_p1 }
  0x39   : > { %443 = shalt.err (!%p440_p4)
}
  0x3a   : > { %s444_s25 = scalar_lea.vmem %s147_s14, 128  ;;  %s530_s23 = smov [#allocation5]  }
  0x3b   : > { %p445_p5 = scmp.ne.s32.totalorder %s147_s14, %s444_s25  ;;  %s449_s26 = sshll.u32 %s530_s23, 4  ;;  %s450_s26 = int_to_ptr.vmem [resolvable:$false] %s449_s26 }
  0x3c   : > { %s451_s27 = scalar_lea.vmem %s450_s26, 256  ;;  %p452_p11 = scmp.lt.s32.totalorder %s147_s14, %s450_s26 }
  0x3d   : > { %p447_p9 = pnand %p445_p5, %p405_p3  ;;  %p453_p12 = scmp.lt.s32.totalorder %s451_s27, %s444_s25 }
  0x3f   : > { %p448_p0 = pneg %p447_p9  ;;  %p454_p6 = por %p453_p12, %p452_p11 }
  0x41   : > { %p455_p7 = pnand %p454_p6, %p448_p0 }
  0x43   : > { %458 = shalt.err (!%p455_p7)
}
  0x44   : > { %358 = dma.hbm_to_vmem [thread:$0]  (!%p621_p13), %s667_s7, 128, %s147_s14, %s136_s28  }
  0x45   : > { %p759_p1 = scmp.ne.s32.totalorder %s758_s29, 0 }
  0x46   : > { %s693_s5 = sand.u32 (!%p759_p1), 1, %s519_s10   ;;  %p760_p6 = scmp.ne.s32.totalorder (!%p759_p1), %s752_s20, 0 }
  0x47   : > { %155 = sbr.rel (%p759_p1) target bundleno = 158 (0x9e), region = 28  ;;  %s696_s6 = sshll.u32 (!%p759_p1), %s693_s5, 3 }
  0x48   : > { %s158_s8 = scalar_lea.sflag (!%p759_p1), [#allocation3], %s693_s5  ;;  %s161_s30 = scalar_lea.vmem (!%p759_p1), [#allocation2], %s696_s6 }
  0x4c   : > { %502 = dma.done.wait (%p760_p6), %s158_s8, 128  }
  0x4d   : > { %504 = vsyncadd (%p760_p6), %s158_s8, 4294967168  ;;  %s167_s3 = scalar_lea.sflag [#allocation6], %s693_s5  ;;  %s170_s29 = scalar_lea.vmem [#allocation5], %s696_s6 }
  0x4e   : > { %506 = dma.done.wait (%p760_p6), %s167_s3, 128  }
  0x4f   : > { %508 = vsyncadd (%p760_p6), %s167_s3, 4294967168  ;;  %v196_v0 = vld [vmem:[%s161_s30] sm:$0xff]  ;;  %v197_v7 = vld [vmem:[%s170_s29] sm:$0xff]  ;;  %s195_s20 = scalar_lea.vmem [#allocation7], %s696_s6  ;;  %s343_s14 = sshll.u32 %s568_s13, 7 }
  0x50   : > { %v201_v1 = vand.u32 2147483647, %v196_v0  ;;  %v198_v9 = vmax.f32 %v196_v0, 0.0  ;;  %v199_v10 = vmul.f32 %v197_v7, %v196_v0  ;;  %s238_s7 = sshll.u32 %s195_s20, 4  ;;  %s236_s16 = scalar_lea.hbm %s748_s2, %s343_s14  ;;  %s239_s7 = int_to_ptr.vmem [resolvable:$true] %s238_s7 }
  0x51   : > { %s225_s17 = scalar_lea.sflag [#allocation4], %s693_s5  ;;  %s459_s24 = scalar_lea.vmem %s239_s7, 128 }
  0x52   : > { %v202_v2 = vsub.f32 0.0, %v201_v1  ;;  %v200_v14 = vsub.f32 %v198_v9, %v199_v10  ;;  %p460_p13 = scmp.ne.s32.totalorder %s239_s7, %s459_s24  ;;  %p761_p3 = scmp.ne.s32.totalorder %s753_s21, 0 }
  0x53   : > { %s531_s19 = smov [#allocation7]  }
  0x54   : > { %v203_v3 = vmul.f32 1.442695, %v202_v2  ;;  %p461_p7 = pnand %p460_p13, %p761_p3  ;;  %s463_s25 = sshll.u32 %s531_s19, 4  ;;  %s464_s25 = int_to_ptr.vmem [resolvable:$false] %s463_s25 }
  0x55   : > { %s465_s23 = scalar_lea.vmem %s464_s25, 256  ;;  %p466_p10 = scmp.lt.s32.totalorder %s239_s7, %s464_s25 }
  0x56   : > { %397 = vpow2.f32 %v203_v3  ;;  %p462_p8 = pneg %p461_p7  ;;  %p467_p2 = scmp.lt.s32.totalorder %s465_s23, %s459_s24 }
  0x58   : > { %p468_p4 = por %p467_p2, %p466_p10 }
  0x5a   : > { %p469_p5 = pnand %p468_p4, %p462_p8 }
  0x63   : > { %v398_v4 = vpop.eup %397 }
  0x64   : > { %v205_v5 = vadd.f32 1.0, %v398_v4  ;;  %v208_v6 = vmul.f32 -0.5, %v398_v4  ;;  %v211_v11 = vand.u32 2147483647, %v398_v4 }
  0x66   : > { %399 = vlog2.f32 %v205_v5  ;;  %v209_v8 = vadd.f32 1.0, %v208_v6  ;;  %vm212_vm0 = vcmp.lt.f32.partialorder %v211_v11, 0.0004427343 }
  0x68   : > { %v210_v12 = vmul.f32 %v398_v4, %v209_v8 }
  0x73   : > { %v400_v13 = vpop.eup %399 }
  0x74   : > { %v207_v15 = vmul.f32 0.6931472, %v400_v13 }
  0x76   : > { %v213_v16 = vsel %vm212_vm0, %v210_v12, %v207_v15 }
  0x77   : > { %v214_v17 = vadd.f32 %v213_v16, %v200_v14 }
  0x79   : > { %v215_v18 = vsub.f32 0.0, %v214_v17 }
  0x7b   : > { %v216_v19 = vmul.f32 1.442695, %v215_v18 }
  0x7d   : > { %401 = vpow2.f32 %v216_v19 }
  0x8a   : > { %v402_v20 = vpop.eup %401 }
  0x8b   : > { %v218_v21 = vsub.f32 1.0, %v402_v20 }
  0x8d   : > { %v219_v22 = vmul.f32 %v218_v21, %v218_v21 }
  0x8f   : > { %v220_v23 = vmul.f32 %v219_v22, %v214_v17 }
  0x91   : > { %223 = vst [vmem:[%s195_s20] sm:$0xff] %v220_v23 }
  0x92   : > { %472 = shalt.err (!%p469_p5)
}
  0x93   : > { %s473_s13 = scalar_lea.hbm %s236_s16, 128  ;;  %s477_s5 = scalar_lea.hbm %s748_s2, 256 }
  0x94   : > { %p474_p9 = scmp.ne.s32.totalorder %s236_s16, %s473_s13  ;;  %p478_p12 = scmp.lt.s32.totalorder %s236_s16, %s748_s2 }
  0x95   : > { %p479_p1 = scmp.lt.s32.totalorder %s477_s5, %s473_s13 }
  0x96   : > { %p475_p0 = pnand %p474_p9, %p761_p3 }
  0x97   : > { %p480_p6 = por %p479_p1, %p478_p12 }
  0x98   : > { %p476_p11 = pneg %p475_p0 }
  0x9a   : > { %p481_p13 = pnand %p480_p6, %p476_p11 }
  0x9c   : > { %484 = shalt.err (!%p481_p13)
}
  0x9d   : > { %350 = dma.vmem_to_hbm [thread:$0]  (%p761_p3), %s239_s7, 128, %s236_s16, %s225_s17  }
  0x9e PF: > { %s250_s30 = sand.u32 1, %s515_s9   ;;  %p762_p7 = scmp.ne.s32.totalorder %s754_s22, 0 }
  0x9f   : > { %p763_p8 = scmp.ge.s32.totalorder %s527_s12, 2  ;;  %s251_s3 = scalar_lea.sflag [#allocation4], %s250_s30 }
  0xa1   : > { %p360_p10 = pnand %p763_p8, %p762_p7 }
  0xa3   : > { %p361_p2 = pneg %p360_p10 }
  0xa5   : > { %510 = dma.done.wait (%p361_p2), %s251_s3, 128  }
  0xa6   : > { %512 = vsyncadd (%p361_p2), %s251_s3, 4294967168  ;;  %p18_p4 = scmp.ge.s32.totalorder %s572_s15, 4   ;;  %s764_s9 = smov %s519_s10 }
  0xa7   : > { %s765_s10 = smov %s523_s11  ;;  %s766_s11 = smov %s584_s18 }
  0xa8   : > { %s767_s12 = smov %s572_s15  ;;  %20 = sbr.rel (!%p18_p4) target bundleno = 7 (0x7), region = 86 }
  0xad   :  { %256 = vsyncpa [#allocation3], 1 }
  0xae   :  { %258 = vsyncpa [#allocation3 + $0x1], 1 }
  0xaf   :  { %259 = vsyncpa [#allocation6], 1 }
  0xb0   :  { %261 = vsyncpa [#allocation6 + $0x1], 1 }
  0xb1   :  { %262 = vsyncpa [#allocation4], 1 }
  0xb2   :  { %264 = vsyncpa [#allocation4 + $0x1], 1 }

</bundles_post_ra>
